<compile_context>
chip_gen: v7x
topology: tpu7x:2x2x1
jax: 0.10.0
libtpu: 0.0.40
codegen_flags: <defaults>
</compile_context>

<pallas_src>
import functools
import math

import numpy as np
import jax
import jax.numpy as jnp
from jax.experimental import pallas as pl
from jax.experimental.pallas import tpu as pltpu


_TAN_PI_8 = 0.4142135623730951
_PI_4 = math.pi / 4.0
_PI_2 = math.pi / 2.0


def _round_up(x, m):
    return (x + m - 1) // m * m


def _cdiv(a, b):
    return (a + b - 1) // b


def _atan2_nonneg_x(y, x):
    """atan2(y, x) for x >= 0 (result in [-pi/2, pi/2]); VPU + one EUP rcp.

    Single merged divide: with mn=min(|y|,x), mx=max(|y|,x), z=mn/mx,
      big = z > tan(pi/8)  <=>  mn > tan(pi/8)*mx
      w   = (z-1)/(z+1) = (mn-mx)/(mn+mx)   if big   else   z = mn/mx
    so numerator/denominator are selected BEFORE one reciprocal.
    atan Taylor (terms through w^9, |w| <= tan(pi/8)) truncation error < 6e-6.
    """
    ay = jnp.abs(y)
    mn = jnp.minimum(ay, x)
    mx = jnp.maximum(ay, x)
    big = mn > _TAN_PI_8 * mx
    num = jnp.where(big, mn - mx, mn)
    den = jnp.where(big, mn + mx, mx)
    den = jnp.where(den > 0.0, den, 1.0)              # mn == mx == 0 -> w = 0
    r = pl.reciprocal(den, approx=True)               # EUP slot, nearly free
    r = r * (2.0 - den * r)                           # 1 Newton step -> ~f32 exact
    w = num * r                                       # |w| <= tan(pi/8)
    w2 = w * w
    p = w * (1.0 + w2 * (-1.0 / 3 + w2 * (1.0 / 5 + w2 * (-1.0 / 7
             + w2 * (1.0 / 9)))))
    at = jnp.where(big, _PI_4 + p, p)                 # atan(mn/mx)
    res = jnp.where(ay > x, _PI_2 - at, at)           # atan2(|y|, x)
    return jnp.where(y < 0.0, -res, res)


def _sin_cos_small(h):
    """sin(h), cos(h) for |h| <= ~1.2 via short Taylor series (error < 1e-6)."""
    h2 = h * h
    s = h * (1.0 + h2 * (-1.0 / 6 + h2 * (1.0 / 120 + h2 * (-1.0 / 5040
             + h2 * (1.0 / 362880)))))
    c = 1.0 + h2 * (-0.5 + h2 * (1.0 / 24 + h2 * (-1.0 / 720
             + h2 * (1.0 / 40320))))
    return s, c


def theta_ise_kernel(x_ref, o_ref, *, num_degrees, sub_tiles):
    """x_ref: (4, sub_tiles, 8, L), rows = [a, b, c, kappa].
    o_ref: (2*num_degrees, sub_tiles, 8, L), rows = [sin d=0..D-1, cos d=0..D-1].
    pl.loop over (8, L) sub-tiles keeps the live working set at ~40 vregs while
    the per-grid-step DMA payload is sub_tiles x larger (amortizes step cost).
    """
    @pl.loop(0, sub_tiles)
    def _(r):
        a = x_ref[0, r]
        b = x_ref[1, r]
        c = x_ref[2, r]
        kappa = x_ref[3, r]

        norm2d = jnp.sqrt(a * a + b * b)
        radius = jnp.sqrt(2.0 - c * c)
        # TODO(synk): safemath.atan2 differs from plain atan2 only in its
        # backward pass; its forward value (implemented here) matches torch.atan2.
        theta = _atan2_nonneg_x(c, norm2d)            # norm2d >= 0 always
        roughness = pl.reciprocal(kappa * kappa + 1e-8, approx=True)
        falloff = c * c

        y1 = theta * radius                           # |y1| <= pi/sqrt(2)
        sh, ch = _sin_cos_small(0.5 * y1)             # half angle -> small poly arg
        s = 2.0 * sh * ch                             # sin(y1)
        cs = 1.0 - 2.0 * sh * sh                      # cos(y1)

        # exp(-0.5*roughness*scale^2) at scale=1; scale^2 quadruples per degree
        # so the envelope advances by env -> (env^2)^2 (VPU only, ONE exp).
        # NOTE: repeated squaring amplifies f32 exp error ~4^(D-1); fine for
        # D <= ~6 at the stated tolerance -- recompute exp directly if D grows.
        env = jnp.exp(-0.5 * roughness)

        for d in range(num_degrees):                  # scales are exactly 2**d
            m = env * falloff
            o_ref[d, r] = m * s                       # sin half of fused output
            o_ref[num_degrees + d, r] = m * cs        # cos half of fused output
            if d + 1 < num_degrees:
                s, cs = 2.0 * s * cs, cs * cs - s * s  # angle doubling: scale *= 2
                env = env * env
                env = env * env


def theta_ise_packed(packed, max_degree=1, *, lanes=512, sub_tiles_per_step=16):
    """Relayout-free fast path (recommended API for performance).

    packed: (4, B) float32, rows [a, b, c, kappa], batch on the fast axis.
    Returns (2*max_degree, B): rows [0:D] = mul*sin(y), rows [D:2D] = mul*cos(y).
    `lanes` (multiple of 128; 256-512 recommended to bound vreg pressure) is the
    lane width of one compute sub-tile; `sub_tiles_per_step` is how many (8,lanes)
    sub-tiles one grid step DMAs (sweepable upward to amortize step overhead).
    """
    D = int(max_degree)
    assert D >= 1
    nrows, B = packed.shape
    assert nrows == 4
    packed = packed.astype(jnp.float32)

    lanes = max(128, _round_up(int(lanes), 128))
    sub_elems = 8 * lanes                             # batch elems per sub-tile
    n_sub = _cdiv(B, sub_elems)

    sb = max(1, min(int(sub_tiles_per_step), n_sub))
    # Keep double-buffered in+out blocks comfortably under the 32 MiB scoped
    # VMEM default (v7x physical VMEM is 64 MiB, not 128 MiB).
    step_bytes = 2 * (4 + 2 * D) * sub_elems * 4      # per sub-tile, double-buffered
    sb = max(1, min(sb, (24 * 1024 * 1024) // step_bytes))
    # Keep >= 2 grid steps when possible so ("parallel",) can use both v7x cores.
    if n_sub >= 2:
        sb = min(sb, max(1, n_sub // 2))

    n_sub_pad = _cdiv(n_sub, sb) * sb
    bp = n_sub_pad * sub_elems
    if bp != B:
        # Zero padding is NaN/Inf-safe: kappa=0 -> roughness ~1e8 -> env
        # underflows to exactly 0, falloff = 0, atan2(0, 0) = 0.
        packed = jnp.pad(packed, ((0, 0), (0, bp - B)))
    x = packed.reshape(4, n_sub_pad, 8, lanes)

    kernel = functools.partial(theta_ise_kernel, num_degrees=D, sub_tiles=sb)
    out = pl.pallas_call(
        kernel,
        out_shape=jax.ShapeDtypeStruct((2 * D, n_sub_pad, 8, lanes), jnp.float32),
        grid_spec=pltpu.PrefetchScalarGridSpec(
            num_scalar_prefetch=0,
            grid=(n_sub_pad // sb,),
            in_specs=[pl.BlockSpec((4, sb, 8, lanes), lambda i: (0, i, 0, 0))],
            out_specs=pl.BlockSpec((2 * D, sb, 8, lanes), lambda i: (0, i, 0, 0)),
        ),
        compiler_params=pltpu.CompilerParams(
            dimension_semantics=("parallel",)),
        cost_estimate=pl.CostEstimate(
            flops=(65 + 10 * D) * bp,
            transcendentals=3 * bp,
            bytes_accessed=(16 + 8 * D) * bp),
    )(x)

    # Contiguous reshape (free) + cheap tail slice; no transpose on this path.
    return out.reshape(2 * D, bp)[:, :B]


def theta_ise(vec, kappa, max_degree=1, *, lanes=512, sub_tiles_per_step=16):
    """Torch-layout wrapper matching ThetaISEHack.forward:
    vec (B, 3), kappa (B,) -> [mul*sin(y) (B, D), mul*cos(y) (B, D)].

    NOTE: the (B,3)->(4,B) pack and the (2D,B)->(B,D) transposes here are HBM
    relayouts outside the kernel; call this under your own jit (so they fuse
    with neighbouring ops) or use `theta_ise_packed` directly to avoid them.
    """
    B = int(vec.shape[0])
    D = int(max_degree)
    vec = jnp.asarray(vec, jnp.float32)
    kappa = jnp.asarray(kappa, jnp.float32).reshape(B)
    packed = jnp.concatenate([vec.T, kappa[None, :]], axis=0)       # (4, B)
    out = theta_ise_packed(packed, D, lanes=lanes,
                           sub_tiles_per_step=sub_tiles_per_step)   # (2D, B)
    return [out[:D].T, out[D:].T]


def theta_ise_ref(vec, kappa, max_degree=1):
    """Pure numpy reference mirroring ThetaISEHack.forward."""
    vec = np.asarray(vec, np.float32)
    kappa = np.asarray(kappa, np.float32)
    B = vec.shape[0]
    scales = np.array([2.0 ** i for i in range(max_degree)], dtype=np.float32)
    a, b, c = vec[:, 0:1], vec[:, 1:2], vec[:, 2:3]
    norm2d = np.sqrt(a ** 2 + b ** 2)
    radius = np.sqrt(2.0 - c ** 2)
    theta = np.arctan2(c, norm2d)
    roughness = 1.0 / (kappa ** 2 + 1e-8)
    falloff = c ** 2
    x = theta * radius                                              # (B, 1)
    y = (x[..., None] * scales[None, None, :]).reshape(B, -1)       # (B, D)
    mul = np.exp(-0.5 * roughness.reshape(-1, 1) * scales[None, :] ** 2) * falloff
    return mul * np.sin(y), mul * np.cos(y)


if __name__ == "__main__":
    key = jax.random.PRNGKey(0)

    theta_ise_jit = jax.jit(
        theta_ise, static_argnames=("max_degree", "lanes", "sub_tiles_per_step"))

    # B=2000: single-step grid + padding; B=9473: multi-step grid (>=2 parallel
    # steps) + padding of the last sub-tile.
    for B in (2000, 9473):
        kb1, kb2 = jax.random.split(jax.random.fold_in(key, B))
        vec = jax.random.normal(kb1, (B, 3), dtype=jnp.float32)
        vec = vec / jnp.linalg.norm(vec, axis=1, keepdims=True)
        kappa = jax.random.uniform(kb2, (B,), dtype=jnp.float32,
                                   minval=0.5, maxval=4.0)
        for deg in (1, 4):
            sin_out, cos_out = theta_ise_jit(vec, kappa, max_degree=deg)
            jax.block_until_ready((sin_out, cos_out))
            ref_s, ref_c = theta_ise_ref(np.asarray(vec), np.asarray(kappa),
                                         max_degree=deg)
            np.testing.assert_allclose(np.asarray(sin_out), ref_s,
                                       rtol=1e-2, atol=2e-4)
            np.testing.assert_allclose(np.asarray(cos_out), ref_c,
                                       rtol=1e-2, atol=2e-4)

    print("KERNEL_OK")
</pallas_src>

<mosaic_0001>
module attributes {stable_mosaic.version = 11 : i64} {
  func.func @theta_ise_kernel(%arg0: i32, %arg1: memref<4x1x8x512xf32, #tpu.memory_space<vmem>>, %arg2: memref<2x1x8x512xf32, #tpu.memory_space<vmem>>) attributes {dimension_semantics = [#tpu.dimension_semantics<parallel>], iteration_bounds = array<i64: 1>, scalar_prefetch = 0 : i64, scratch_operands = 0 : i64, tpu.core_type = #tpu.core_type<tc>, window_params = [{transform_indices = @transform_0, window_bounds = array<i64: 4, 1, 8, 512>}, {transform_indices = @transform_1, window_bounds = array<i64: 2, 1, 8, 512>}]} {
    %c0_i32 = arith.constant 0 : i32
    %c1_i32 = arith.constant 1 : i32
    %0 = arith.muli %c0_i32, %c1_i32 : i32
    %c0_i32_0 = arith.constant 0 : i32
    %1 = arith.addi %c0_i32_0, %0 : i32
    %c0 = arith.constant 0 : index
    %2 = arith.index_cast %1 : i32 to index
    %c0_1 = arith.constant 0 : index
    %c0_2 = arith.constant 0 : index
    %3 = vector.load %arg1[%c0, %2, %c0_1, %c0_2] : memref<4x1x8x512xf32, #tpu.memory_space<vmem>>, vector<1x1x8x512xf32>
    %4 = vector.shape_cast %3 : vector<1x1x8x512xf32> to vector<8x512xf32>
    %c1 = arith.constant 1 : index
    %5 = arith.index_cast %1 : i32 to index
    %c0_3 = arith.constant 0 : index
    %c0_4 = arith.constant 0 : index
    %6 = vector.load %arg1[%c1, %5, %c0_3, %c0_4] : memref<4x1x8x512xf32, #tpu.memory_space<vmem>>, vector<1x1x8x512xf32>
    %7 = vector.shape_cast %6 : vector<1x1x8x512xf32> to vector<8x512xf32>
    %c2 = arith.constant 2 : index
    %8 = arith.index_cast %1 : i32 to index
    %c0_5 = arith.constant 0 : index
    %c0_6 = arith.constant 0 : index
    %9 = vector.load %arg1[%c2, %8, %c0_5, %c0_6] : memref<4x1x8x512xf32, #tpu.memory_space<vmem>>, vector<1x1x8x512xf32>
    %10 = vector.shape_cast %9 : vector<1x1x8x512xf32> to vector<8x512xf32>
    %c3 = arith.constant 3 : index
    %11 = arith.index_cast %1 : i32 to index
    %c0_7 = arith.constant 0 : index
    %c0_8 = arith.constant 0 : index
    %12 = vector.load %arg1[%c3, %11, %c0_7, %c0_8] : memref<4x1x8x512xf32, #tpu.memory_space<vmem>>, vector<1x1x8x512xf32>
    %13 = vector.shape_cast %12 : vector<1x1x8x512xf32> to vector<8x512xf32>
    %14 = arith.mulf %4, %4 : vector<8x512xf32>
    %15 = arith.mulf %7, %7 : vector<8x512xf32>
    %16 = arith.addf %14, %15 : vector<8x512xf32>
    %17 = math.sqrt %16 : vector<8x512xf32>
    %18 = arith.mulf %10, %10 : vector<8x512xf32>
    %cst = arith.constant 2.000000e+00 : f32
    %19 = vector.broadcast %cst : f32 to vector<8x512xf32>
    %20 = arith.subf %19, %18 : vector<8x512xf32>
    %21 = math.sqrt %20 : vector<8x512xf32>
    %22 = math.absf %10 : vector<8x512xf32>
    %23 = arith.minimumf %22, %17 : vector<8x512xf32>
    %24 = arith.maximumf %22, %17 : vector<8x512xf32>
    %cst_9 = arith.constant 0.414213568 : f32
    %25 = vector.broadcast %cst_9 : f32 to vector<8x512xf32>
    %26 = arith.mulf %25, %24 : vector<8x512xf32>
    %27 = arith.cmpf ogt, %23, %26 : vector<8x512xf32>
    %28 = arith.subf %23, %24 : vector<8x512xf32>
    %29 = arith.select %27, %28, %23 : vector<8x512xi1>, vector<8x512xf32>
    %30 = arith.addf %23, %24 : vector<8x512xf32>
    %31 = arith.select %27, %30, %24 : vector<8x512xi1>, vector<8x512xf32>
    %cst_10 = arith.constant 0.000000e+00 : f32
    %32 = vector.broadcast %cst_10 : f32 to vector<8x512xf32>
    %33 = arith.cmpf ogt, %31, %32 : vector<8x512xf32>
    %cst_11 = arith.constant 1.000000e+00 : f32
    %34 = vector.broadcast %cst_11 : f32 to vector<8x512xf32>
    %35 = arith.select %33, %31, %34 : vector<8x512xi1>, vector<8x512xf32>
    %36 = tpu.reciprocal %35 {approx = true} : vector<8x512xf32> -> vector<8x512xf32>
    %37 = arith.mulf %35, %36 : vector<8x512xf32>
    %cst_12 = arith.constant 2.000000e+00 : f32
    %38 = vector.broadcast %cst_12 : f32 to vector<8x512xf32>
    %39 = arith.subf %38, %37 : vector<8x512xf32>
    %40 = arith.mulf %36, %39 : vector<8x512xf32>
    %41 = arith.mulf %29, %40 : vector<8x512xf32>
    %42 = arith.mulf %41, %41 : vector<8x512xf32>
    %cst_13 = arith.constant 0.111111112 : f32
    %43 = vector.broadcast %cst_13 : f32 to vector<8x512xf32>
    %44 = arith.mulf %42, %43 : vector<8x512xf32>
    %cst_14 = arith.constant -0.142857149 : f32
    %45 = vector.broadcast %cst_14 : f32 to vector<8x512xf32>
    %46 = arith.addf %45, %44 : vector<8x512xf32>
    %47 = arith.mulf %42, %46 : vector<8x512xf32>
    %cst_15 = arith.constant 2.000000e-01 : f32
    %48 = vector.broadcast %cst_15 : f32 to vector<8x512xf32>
    %49 = arith.addf %48, %47 : vector<8x512xf32>
    %50 = arith.mulf %42, %49 : vector<8x512xf32>
    %cst_16 = arith.constant -0.333333343 : f32
    %51 = vector.broadcast %cst_16 : f32 to vector<8x512xf32>
    %52 = arith.addf %51, %50 : vector<8x512xf32>
    %53 = arith.mulf %42, %52 : vector<8x512xf32>
    %cst_17 = arith.constant 1.000000e+00 : f32
    %54 = vector.broadcast %cst_17 : f32 to vector<8x512xf32>
    %55 = arith.addf %54, %53 : vector<8x512xf32>
    %56 = arith.mulf %41, %55 : vector<8x512xf32>
    %cst_18 = arith.constant 0.785398185 : f32
    %57 = vector.broadcast %cst_18 : f32 to vector<8x512xf32>
    %58 = arith.addf %57, %56 : vector<8x512xf32>
    %59 = arith.select %27, %58, %56 : vector<8x512xi1>, vector<8x512xf32>
    %60 = arith.cmpf ogt, %22, %17 : vector<8x512xf32>
    %cst_19 = arith.constant 1.57079637 : f32
    %61 = vector.broadcast %cst_19 : f32 to vector<8x512xf32>
    %62 = arith.subf %61, %59 : vector<8x512xf32>
    %63 = arith.select %60, %62, %59 : vector<8x512xi1>, vector<8x512xf32>
    %cst_20 = arith.constant 0.000000e+00 : f32
    %64 = vector.broadcast %cst_20 : f32 to vector<8x512xf32>
    %65 = arith.cmpf olt, %10, %64 : vector<8x512xf32>
    %cst_21 = arith.constant 0.000000e+00 : f32
    %66 = vector.broadcast %cst_21 : f32 to vector<8x512xf32>
    %67 = arith.subf %66, %63 : vector<8x512xf32>
    %68 = arith.select %65, %67, %63 : vector<8x512xi1>, vector<8x512xf32>
    %69 = arith.mulf %13, %13 : vector<8x512xf32>
    %cst_22 = arith.constant 9.99999993E-9 : f32
    %70 = vector.broadcast %cst_22 : f32 to vector<8x512xf32>
    %71 = arith.addf %69, %70 : vector<8x512xf32>
    %72 = tpu.reciprocal %71 {approx = true} : vector<8x512xf32> -> vector<8x512xf32>
    %73 = arith.mulf %10, %10 : vector<8x512xf32>
    %74 = arith.mulf %68, %21 : vector<8x512xf32>
    %cst_23 = arith.constant 5.000000e-01 : f32
    %75 = vector.broadcast %cst_23 : f32 to vector<8x512xf32>
    %76 = arith.mulf %75, %74 : vector<8x512xf32>
    %77 = arith.mulf %76, %76 : vector<8x512xf32>
    %cst_24 = arith.constant 2.75573188E-6 : f32
    %78 = vector.broadcast %cst_24 : f32 to vector<8x512xf32>
    %79 = arith.mulf %77, %78 : vector<8x512xf32>
    %cst_25 = arith.constant -1.98412701E-4 : f32
    %80 = vector.broadcast %cst_25 : f32 to vector<8x512xf32>
    %81 = arith.addf %80, %79 : vector<8x512xf32>
    %82 = arith.mulf %77, %81 : vector<8x512xf32>
    %cst_26 = arith.constant 0.00833333377 : f32
    %83 = vector.broadcast %cst_26 : f32 to vector<8x512xf32>
    %84 = arith.addf %83, %82 : vector<8x512xf32>
    %85 = arith.mulf %77, %84 : vector<8x512xf32>
    %cst_27 = arith.constant -0.166666672 : f32
    %86 = vector.broadcast %cst_27 : f32 to vector<8x512xf32>
    %87 = arith.addf %86, %85 : vector<8x512xf32>
    %88 = arith.mulf %77, %87 : vector<8x512xf32>
    %cst_28 = arith.constant 1.000000e+00 : f32
    %89 = vector.broadcast %cst_28 : f32 to vector<8x512xf32>
    %90 = arith.addf %89, %88 : vector<8x512xf32>
    %91 = arith.mulf %76, %90 : vector<8x512xf32>
    %cst_29 = arith.constant 2.48015876E-5 : f32
    %92 = vector.broadcast %cst_29 : f32 to vector<8x512xf32>
    %93 = arith.mulf %77, %92 : vector<8x512xf32>
    %cst_30 = arith.constant -0.00138888892 : f32
    %94 = vector.broadcast %cst_30 : f32 to vector<8x512xf32>
    %95 = arith.addf %94, %93 : vector<8x512xf32>
    %96 = arith.mulf %77, %95 : vector<8x512xf32>
    %cst_31 = arith.constant 0.0416666679 : f32
    %97 = vector.broadcast %cst_31 : f32 to vector<8x512xf32>
    %98 = arith.addf %97, %96 : vector<8x512xf32>
    %99 = arith.mulf %77, %98 : vector<8x512xf32>
    %cst_32 = arith.constant -5.000000e-01 : f32
    %100 = vector.broadcast %cst_32 : f32 to vector<8x512xf32>
    %101 = arith.addf %100, %99 : vector<8x512xf32>
    %102 = arith.mulf %77, %101 : vector<8x512xf32>
    %cst_33 = arith.constant 1.000000e+00 : f32
    %103 = vector.broadcast %cst_33 : f32 to vector<8x512xf32>
    %104 = arith.addf %103, %102 : vector<8x512xf32>
    %cst_34 = arith.constant 2.000000e+00 : f32
    %105 = vector.broadcast %cst_34 : f32 to vector<8x512xf32>
    %106 = arith.mulf %105, %91 : vector<8x512xf32>
    %107 = arith.mulf %106, %104 : vector<8x512xf32>
    %cst_35 = arith.constant 2.000000e+00 : f32
    %108 = vector.broadcast %cst_35 : f32 to vector<8x512xf32>
    %109 = arith.mulf %108, %91 : vector<8x512xf32>
    %110 = arith.mulf %109, %91 : vector<8x512xf32>
    %cst_36 = arith.constant 1.000000e+00 : f32
    %111 = vector.broadcast %cst_36 : f32 to vector<8x512xf32>
    %112 = arith.subf %111, %110 : vector<8x512xf32>
    %cst_37 = arith.constant -5.000000e-01 : f32
    %113 = vector.broadcast %cst_37 : f32 to vector<8x512xf32>
    %114 = arith.mulf %113, %72 : vector<8x512xf32>
    %115 = math.exp %114 : vector<8x512xf32>
    %116 = arith.mulf %115, %73 : vector<8x512xf32>
    %117 = arith.mulf %116, %107 : vector<8x512xf32>
    %c0_38 = arith.constant 0 : index
    %118 = arith.index_cast %1 : i32 to index
    %c0_39 = arith.constant 0 : index
    %c0_40 = arith.constant 0 : index
    %119 = vector.load %arg2[%c0_38, %118, %c0_39, %c0_40] : memref<2x1x8x512xf32, #tpu.memory_space<vmem>>, vector<1x1x8x512xf32>
    %120 = vector.shape_cast %119 : vector<1x1x8x512xf32> to vector<8x512xf32>
    %121 = vector.shape_cast %117 : vector<8x512xf32> to vector<1x1x8x512xf32>
    tpu.vector_store %arg2[%c0_38, %118, %c0_39, %c0_40], %121 {strides = array<i32>} : memref<2x1x8x512xf32, #tpu.memory_space<vmem>>, vector<1x1x8x512xf32>,
    %122 = arith.mulf %116, %112 : vector<8x512xf32>
    %c1_41 = arith.constant 1 : index
    %123 = arith.index_cast %1 : i32 to index
    %c0_42 = arith.constant 0 : index
    %c0_43 = arith.constant 0 : index
    %124 = vector.load %arg2[%c1_41, %123, %c0_42, %c0_43] : memref<2x1x8x512xf32, #tpu.memory_space<vmem>>, vector<1x1x8x512xf32>
    %125 = vector.shape_cast %124 : vector<1x1x8x512xf32> to vector<8x512xf32>
    %126 = vector.shape_cast %122 : vector<8x512xf32> to vector<1x1x8x512xf32>
    tpu.vector_store %arg2[%c1_41, %123, %c0_42, %c0_43], %126 {strides = array<i32>} : memref<2x1x8x512xf32, #tpu.memory_space<vmem>>, vector<1x1x8x512xf32>,
    %c1_i32_44 = arith.constant 1 : i32
    return
  }
  func.func @transform_0(%arg0: i32) -> (i32, i32, i32, i32) {
    %c0_i32 = arith.constant 0 : i32
    %c0_i32_0 = arith.constant 0 : i32
    %c0_i32_1 = arith.constant 0 : i32
    %c0_i32_2 = arith.constant 0 : i32
    return %c0_i32, %arg0, %c0_i32_0, %c0_i32_1 : i32, i32, i32, i32
  }
  func.func @transform_1(%arg0: i32) -> (i32, i32, i32, i32) {
    %c0_i32 = arith.constant 0 : i32
    %c0_i32_0 = arith.constant 0 : i32
    %c0_i32_1 = arith.constant 0 : i32
    %c0_i32_2 = arith.constant 0 : i32
    return %c0_i32, %arg0, %c0_i32_0, %c0_i32_1 : i32, i32, i32, i32
  }
}

</mosaic_0001>

<bundles_post_ra>
// kernel: theta_ise.1
= control target key start
LH: loop header
LB: loop body
LE: loop exit
PB: predicated region body
PF: predicated region fallthrough
CT: control target
= control target key end

     0   :  { %s791_s0 = inlined_call_operand.vmem [shape: f32[4,1,8,512], index: 0, kind: input, shape index: {}]   ;;  %s792_s1 = inlined_call_operand.vmem [shape: f32[2,1,8,512], index: 1, kind: output, shape index: {}]  }
   0x1   :  { %v8_v0 = vld [vmem:[%s791_s0] sm:$0xff]  ;;  %v9_v4 = vld [vmem:[%s791_s0 + $0x8] sm:$0xff]  ;;  %v10_v10 = vld [vmem:[%s791_s0 + $0x10] sm:$0xff] }
   0x2   :  { %v384_v1 = vld [vmem:[%s791_s0 + $0x20] sm:$0xff]  ;;  %v27_v2 = vmul.f32 %v8_v0, %v8_v0  ;;  %v385_v5 = vld [vmem:[%s791_s0 + $0x28] sm:$0xff]  ;;  %v28_v6 = vmul.f32 %v9_v4, %v9_v4  ;;  %v386_v11 = vld [vmem:[%s791_s0 + $0x30] sm:$0xff]  ;;  %v29_v12 = vmul.f32 %v10_v10, %v10_v10 }
   0x3   :  { %v31_v3 = vmul.f32 %v384_v1, %v384_v1  ;;  %v32_v7 = vmul.f32 %v385_v5, %v385_v5  ;;  %v33_v13 = vmul.f32 %v386_v11, %v386_v11  ;;  %v11_v14 = vld [vmem:[%s791_s0 + $0x18] sm:$0xff]  ;;  %v477_v19 = vld [vmem:[%s791_s0 + $0x40] sm:$0xff]  ;;  %v485_v25 = vld [vmem:[%s791_s0 + $0x48] sm:$0xff] }
   0x4   :  { %v387_v15 = vld [vmem:[%s791_s0 + $0x38] sm:$0xff]  ;;  %v30_v17 = vmul.f32 %v11_v14, %v11_v14  ;;  %v480_v24 = vand.u32 2147483647, %v477_v19  ;;  %v490_v31 = vand.u32 2147483647, %v485_v25  ;;  %v501_v35 = vld [vmem:[%s791_s0 + $0x50] sm:$0xff] }
   0x5   :  { %v35_v8 = vadd.f32 %v31_v3, %v27_v2  ;;  %v36_v9 = vadd.f32 %v32_v7, %v28_v6  ;;  %v37_v16 = vadd.f32 %v33_v13, %v29_v12  ;;  %v34_v18 = vmul.f32 %v387_v15, %v387_v15  ;;  %v540_v53 = vld [vmem:[%s791_s0 + $0x58] sm:$0xff]  ;;  %v392_v13 = vld [vmem:[%s791_s0 + $0x60] sm:$0xff] }
   0x6   :  { %v519_v42 = vand.u32 2147483647, %v501_v35  ;;  %v552_v61 = vand.u32 2147483647, %v540_v53 }
   0x7   :  { %400 = vrsqrt.f32 %v35_v8  ;;  %vm41_vm0 = vcmp.eq.f32.partialorder %v35_v8, inf  ;;  %v44_v21 = vand.u32 2147483648, %v35_v8  ;;  %v38_v22 = vadd.f32 %v34_v18, %v30_v17 }
   0x8   :  { %402 = vrsqrt.f32 %v36_v9  ;;  %vm43_vm1 = vcmp.eq.f32.partialorder %v35_v8, 0.0  ;;  %vm48_vm2 = vcmp.eq.f32.partialorder %v36_v9, inf  ;;  %v51_v28 = vand.u32 2147483648, %v36_v9 }
   0x9   :  { %404 = vrsqrt.f32 %v37_v16  ;;  %vm50_vm3 = vcmp.eq.f32.partialorder %v36_v9, 0.0  ;;  %vm55_vm5 = vcmp.eq.f32.partialorder %v37_v16, inf  ;;  %v58_v45 = vand.u32 2147483648, %v37_v16 }
   0xa   :  { %406 = vrsqrt.f32 %v38_v22  ;;  %vm57_vm7 = vcmp.eq.f32.partialorder %v37_v16, 0.0  ;;  %vm62_vm10 = vcmp.eq.f32.partialorder %v38_v22, inf  ;;  %v65_v57 = vand.u32 2147483648, %v38_v22 }
   0xb   :  { %vm64_vm11 = vcmp.eq.f32.partialorder %v38_v22, 0.0 }
  0x11   :  { %v401_v20 = vpop.eup %400 }
  0x12   :  { %v40_v23 = vmul.f32 %v401_v20, %v35_v8  ;;  %v403_v26 = vpop.eup %402 }
  0x13   :  { %v47_v30 = vmul.f32 %v403_v26, %v36_v9  ;;  %v405_v39 = vpop.eup %404 }
  0x14   :  { %v42_v27 = vsel %vm41_vm0, %v35_v8, %v40_v23  ;;  %v54_v47 = vmul.f32 %v405_v39, %v37_v16  ;;  %v407_v49 = vpop.eup %406 }
  0x15   :  { %v487_v29 = vsel %vm43_vm1, %v44_v21, %v42_v27  ;;  %v49_v34 = vsel %vm48_vm2, %v36_v9, %v47_v30  ;;  %v61_v58 = vmul.f32 %v407_v49, %v38_v22  ;;  %v607_v30 = vmul.f32 %v485_v25, %v485_v25 }
  0x16   :  { %v494_v32 = vmin.f32 %v480_v24, %v487_v29  ;;  %v111_v33 = vmax.f32 %v480_v24, %v487_v29  ;;  %v506_v38 = vsel %vm50_vm3, %v51_v28, %v49_v34  ;;  %v56_v51 = vsel %vm55_vm5, %v37_v16, %v54_v47  ;;  %v393_v47 = vld [vmem:[%s791_s0 + $0x68] sm:$0xff] }
  0x17   :  { %v510_v40 = vmin.f32 %v490_v31, %v506_v38  ;;  %v514_v41 = vmax.f32 %v490_v31, %v506_v38  ;;  %v535_v52 = vsel %vm57_vm7, %v58_v45, %v56_v51  ;;  %v63_v62 = vsel %vm62_vm10, %v38_v22, %v61_v58 }
  0x18   :  { %v503_v36 = vmul.f32 0.41421357, %v111_v33  ;;  %v131_v37 = vadd.f32 %v111_v33, %v494_v32  ;;  %v544_v55 = vmin.f32 %v519_v42, %v535_v52  ;;  %v113_v56 = vmax.f32 %v519_v42, %v535_v52 }
  0x19   :  { %v525_v44 = vmul.f32 0.41421357, %v514_v41  ;;  %v132_v46 = vadd.f32 %v514_v41, %v510_v40  ;;  %v556_v63 = vsel %vm64_vm11, %v65_v57, %v63_v62  ;;  %v123_v5 = vsub.f32 %v494_v32, %v111_v33 }
  0x1a   :  { %vm119_vm4 = vcmp.gt.f32.partialorder %v494_v32, %v503_v36  ;;  %v548_v59 = vmul.f32 0.41421357, %v113_v56  ;;  %v133_v60 = vadd.f32 %v113_v56, %v544_v55  ;;  %v563_v1 = vmin.f32 %v552_v61, %v556_v63 }
  0x1b   :  { %v135_v43 = vsel %vm119_vm4, %v131_v37, %v111_v33  ;;  %vm120_vm8 = vcmp.gt.f32.partialorder %v510_v40, %v525_v44  ;;  %v567_v2 = vmax.f32 %v552_v61, %v556_v63  ;;  %v124_v11 = vsub.f32 %v510_v40, %v514_v41 }
  0x1c   :  { %vm139_vm6 = vcmp.gt.f32.partialorder %v135_v43, 0.0  ;;  %v136_v50 = vsel %vm120_vm8, %v132_v46, %v514_v41  ;;  %vm121_vm12 = vcmp.gt.f32.partialorder %v544_v55, %v548_v59  ;;  %v127_v14 = vsel %vm119_vm4, %v123_v5, %v494_v32  ;;  %v395_v32 = vld [vmem:[%s791_s0 + $0x78] sm:$0xff] }
  0x1d   :  { %v143_v48 = vsel %vm139_vm6, %v135_v43, 1.0  ;;  %vm140_vm9 = vcmp.gt.f32.partialorder %v136_v50, 0.0  ;;  %v137_v0 = vsel %vm121_vm12, %v133_v60, %v113_v56  ;;  %v571_v6 = vmul.f32 0.41421357, %v567_v2 }
  0x1e   :  { %408 = vrcp.f32 %v143_v48  ;;  %v144_v54 = vsel %vm140_vm9, %v136_v50, 1.0  ;;  %vm141_vm13 = vcmp.gt.f32.partialorder %v137_v0, 0.0  ;;  %v134_v7 = vadd.f32 %v567_v2, %v563_v1 }
  0x1f   :  { %410 = vrcp.f32 %v144_v54  ;;  %v145_v3 = vsel %vm141_vm13, %v137_v0, 1.0  ;;  %vm122_vm14 = vcmp.gt.f32.partialorder %v563_v1, %v571_v6  ;;  %v592_v16 = vmul.f32 %v477_v19, %v477_v19 }
  0x20   :  { %412 = vrcp.f32 %v145_v3  ;;  %v138_v12 = vsel %vm122_vm14, %v134_v7, %v567_v2  ;;  %v239_v22 = vmul.f32 %v392_v13, %v392_v13  ;;  %v128_v23 = vsel %vm120_vm8, %v124_v11, %v510_v40 }
  0x21   :  { %vm142_vm15 = vcmp.gt.f32.partialorder %v138_v12, 0.0  ;;  %v601_v27 = vsub.f32 2.0, %v592_v16  ;;  %v125_v37 = vsub.f32 %v544_v55, %v113_v56  ;;  %v627_v56 = vmul.f32 %v501_v35, %v501_v35 }
  0x22   :  { %v146_v18 = vsel %vm142_vm15, %v138_v12, 1.0  ;;  %v243_v41 = vadd.f32 1e-08, %v239_v22  ;;  %v240_v62 = vmul.f32 %v393_v47, %v393_v47  ;;  %v126_v0 = vsub.f32 %v563_v1, %v567_v2 }
  0x23   :  { %414 = vrcp.f32 %v146_v18  ;;  %v129_v51 = vsel %vm121_vm12, %v125_v37, %v544_v55  ;;  %vm77_vm0 = vcmp.eq.f32.partialorder %v601_v27, inf  ;;  %vm79_vm1 = vcmp.eq.f32.partialorder %v601_v27, 0.0 }
  0x24   :  { %416 = vrsqrt.f32 %v601_v27  ;;  %v244_v13 = vadd.f32 1e-08, %v240_v62  ;;  %v130_v2 = vsel %vm122_vm14, %v126_v0, %v563_v1  ;;  %vm227_vm2 = vcmp.lt.f32.partialorder %v477_v19, 0.0 }
  0x25   :  { %418 = vrcp.f32 %v243_v41  ;;  %vm228_vm6 = vcmp.lt.f32.partialorder %v485_v25, 0.0  ;;  %vm215_vm9 = vcmp.gt.f32.partialorder %v480_v24, %v487_v29  ;;  %vm229_vm11 = vcmp.lt.f32.partialorder %v501_v35, 0.0 }
  0x26   :  { %vm217_vm13 = vcmp.gt.f32.partialorder %v519_v42, %v535_v52  ;;  %vm230_vm15 = vcmp.lt.f32.partialorder %v540_v53, 0.0 }
  0x28   :  { %v409_v4 = vpop.eup %408 }
  0x29   :  { %v151_v8 = vmul.f32 %v409_v4, %v143_v48  ;;  %v411_v9 = vpop.eup %410  ;;  %v619_v48 = vsub.f32 2.0, %v607_v30 }
  0x2a   :  { %v152_v15 = vmul.f32 %v411_v9, %v144_v54  ;;  %v413_v33 = vpop.eup %412 }
  0x2b   :  { %v155_v10 = vsub.f32 2.0, %v151_v8  ;;  %v153_v43 = vmul.f32 %v413_v33, %v145_v3  ;;  %420 = vrsqrt.f32 %v619_v48  ;;  %vm84_vm3 = vcmp.eq.f32.partialorder %v619_v48, inf }
  0x2c   :  { %v156_v20 = vsub.f32 2.0, %v152_v15  ;;  %vm86_vm5 = vcmp.eq.f32.partialorder %v619_v48, 0.0  ;;  %v87_v0 = vand.u32 2147483648, %v619_v48 }
  0x2d   :  { %v159_v17 = vmul.f32 %v409_v4, %v155_v10  ;;  %v157_v49 = vsub.f32 2.0, %v153_v43  ;;  %v415_v58 = vpop.eup %414  ;;  %v394_v43 = vld [vmem:[%s791_s0 + $0x70] sm:$0xff] }
  0x2e   :  { %v160_v26 = vmul.f32 %v411_v9, %v156_v20  ;;  %v154_v5 = vmul.f32 %v415_v58, %v146_v18  ;;  %v635_v9 = vsub.f32 2.0, %v627_v56  ;;  %v417_v22 = vpop.eup %416 }
  0x2f   :  { %v594_v21 = vmul.f32 %v159_v17, %v127_v14  ;;  %v161_v57 = vmul.f32 %v413_v33, %v157_v49  ;;  %v645_v17 = vmul.f32 %v540_v53, %v540_v53  ;;  %v76_v49 = vmul.f32 %v417_v22, %v601_v27 }
  0x30   :  { %v609_v34 = vmul.f32 %v160_v26, %v128_v23  ;;  %v158_v11 = vsub.f32 2.0, %v154_v5  ;;  %422 = vrsqrt.f32 %v635_v9  ;;  %v241_v5 = vmul.f32 %v394_v43, %v394_v43 }
  0x31   :  { %v167_v28 = vmul.f32 %v594_v21, %v594_v21  ;;  %v632_v4 = vmul.f32 %v161_v57, %v129_v51  ;;  %424 = vrcp.f32 %v244_v13  ;;  %vm91_vm7 = vcmp.eq.f32.partialorder %v635_v9, inf }
  0x32   :  { %v168_v45 = vmul.f32 %v609_v34, %v609_v34  ;;  %v162_v18 = vmul.f32 %v415_v58, %v158_v11  ;;  %vm93_vm10 = vcmp.eq.f32.partialorder %v635_v9, 0.0 }
  0x33   :  { %v171_v39 = vmul.f32 0.11111111, %v167_v28  ;;  %v169_v10 = vmul.f32 %v632_v4, %v632_v4 }
  0x34   :  { %v172_v50 = vmul.f32 0.11111111, %v168_v45  ;;  %v648_v33 = vmul.f32 %v162_v18, %v130_v2 }
  0x35   :  { %v175_v46 = vadd.f32 -0.14285715, %v171_v39  ;;  %v173_v15 = vmul.f32 0.11111111, %v169_v10  ;;  %v419_v39 = vpop.eup %418 }
  0x36   :  { %v176_v60 = vadd.f32 -0.14285715, %v172_v50  ;;  %v660_v47 = vmul.f32 %v648_v33, %v648_v33  ;;  %v80_v50 = vand.u32 2147483648, %v601_v27  ;;  %v347_v62 = vmul.f32 -0.5, %v419_v39 }
  0x37   :  { %v179_v54 = vmul.f32 %v175_v46, %v167_v28  ;;  %v177_v26 = vadd.f32 -0.14285715, %v173_v15 }
  0x38   :  { %v180_v7 = vmul.f32 %v176_v60, %v168_v45  ;;  %v174_v60 = vmul.f32 0.11111111, %v660_v47 }
  0x39   :  { %v183_v3 = vadd.f32 0.2, %v179_v54  ;;  %v181_v46 = vmul.f32 %v177_v26, %v169_v10  ;;  %v421_v54 = vpop.eup %420 }
  0x3a   :  { %v184_v12 = vadd.f32 0.2, %v180_v7  ;;  %v83_v11 = vmul.f32 %v421_v54, %v619_v48  ;;  %v423_v22 = vpop.eup %422 }
  0x3b   :  { %v187_v8 = vmul.f32 %v183_v3, %v167_v28  ;;  %v185_v58 = vadd.f32 0.2, %v181_v46  ;;  %v425_v24 = vpop.eup %424  ;;  %v90_v46 = vmul.f32 %v423_v22, %v635_v9 }
  0x3c   :  { %v188_v20 = vmul.f32 %v184_v12, %v168_v45 }
  0x3d   :  { %v191_v14 = vadd.f32 -0.33333334, %v187_v8  ;;  %v189_v8 = vmul.f32 %v185_v58, %v169_v10  ;;  %v348_v58 = vmul.f32 -0.5, %v425_v24 }
  0x3e   :  { %v192_v37 = vadd.f32 -0.33333334, %v188_v20  ;;  %v245_v20 = vadd.f32 1e-08, %v241_v5 }
  0x3f   :  { %v195_v23 = vmul.f32 %v191_v14, %v167_v28  ;;  %v656_v28 = vsub.f32 2.0, %v645_v17  ;;  %v193_v2 = vadd.f32 -0.33333334, %v189_v8 }
  0x40   :  { %v196_v51 = vmul.f32 %v192_v37, %v168_v45  ;;  %v178_v45 = vadd.f32 -0.14285715, %v174_v60  ;;  %v85_v37 = vsel %vm84_vm3, %v619_v48, %v83_v11 }
  0x41   :  { %v199_v41 = vadd.f32 1.0, %v195_v23  ;;  %426 = vrsqrt.f32 %v656_v28  ;;  %v351_v23 = vmul.f32 1.442695, %v347_v62  ;;  %v197_v26 = vmul.f32 %v193_v2, %v169_v10 }
  0x42   :  { %v200_v3 = vadd.f32 1.0, %v196_v51  ;;  %v182_v14 = vmul.f32 %v178_v45, %v660_v47  ;;  %428 = vrcp.f32 %v245_v20  ;;  %v88_v54 = vsel %vm86_vm5, %v87_v0, %v85_v37 }
  0x43   :  { %v203_v57 = vmul.f32 %v199_v41, %v594_v21  ;;  %v78_v21 = vsel %vm77_vm0, %v601_v27, %v76_v49  ;;  %v201_v41 = vadd.f32 1.0, %v197_v26  ;;  %v94_v49 = vand.u32 2147483648, %v635_v9 }
  0x44   :  { %v204_v12 = vmul.f32 %v200_v3, %v609_v34  ;;  %v81_v34 = vsel %vm79_vm1, %v80_v50, %v78_v21  ;;  %v186_v36 = vadd.f32 0.2, %v182_v14  ;;  %v242_v50 = vmul.f32 %v395_v32, %v395_v32 }
  0x45   :  { %v207_v7 = vadd.f32 0.7853982, %v203_v57  ;;  %v205_v51 = vmul.f32 %v201_v41, %v632_v4  ;;  %430 = vpow2.f32 %v351_v23  ;;  %v92_v4 = vsel %vm91_vm7, %v635_v9, %v90_v46 }
  0x46   :  { %v208_v18 = vadd.f32 0.7853982, %v204_v12  ;;  %v190_v43 = vmul.f32 %v186_v36, %v660_v47  ;;  %v246_v48 = vadd.f32 1e-08, %v242_v50  ;;  %v353_v45 = vmul.f32 1.442695, %v348_v58 }
  0x47   :  { %v211_v13 = vsel %vm119_vm4, %v207_v7, %v203_v57  ;;  %vm216_vm4 = vcmp.gt.f32.partialorder %v490_v31, %v506_v38  ;;  %v209_v62 = vadd.f32 0.7853982, %v205_v51  ;;  %v101_v14 = vand.u32 2147483648, %v656_v28 }
  0x48   :  { %v219_v15 = vsub.f32 1.5707964, %v211_v13  ;;  %v212_v39 = vsel %vm120_vm8, %v208_v18, %v204_v12  ;;  %v194_v31 = vadd.f32 -0.33333334, %v190_v43  ;;  %vm98_vm8 = vcmp.eq.f32.partialorder %v656_v28, inf }
  0x49   :  { %v220_v10 = vsub.f32 1.5707964, %v212_v39  ;;  %v213_v7 = vsel %vm121_vm12, %v209_v62, %v205_v51  ;;  %v95_v12 = vsel %vm93_vm10, %v94_v49, %v92_v4  ;;  %vm100_vm12 = vcmp.eq.f32.partialorder %v656_v28, 0.0 }
  0x4a   :  { %v223_v29 = vsel %vm215_vm9, %v219_v15, %v211_v13  ;;  %v198_v3 = vmul.f32 %v194_v31, %v660_v47  ;;  %v221_v25 = vsub.f32 1.5707964, %v213_v7  ;;  %432 = vrcp.f32 %v246_v48 }
  0x4b   :  { %v231_v27 = vsub.f32 0.0, %v223_v29  ;;  %v224_v44 = vsel %vm216_vm4, %v220_v10, %v212_v39  ;;  %v427_v60 = vpop.eup %426  ;;  %vm218_vm0 = vcmp.gt.f32.partialorder %v552_v61, %v556_v63  ;;  %434 = vpow2.f32 %v353_v45 }
  0x4c   :  { %v232_v57 = vsub.f32 0.0, %v224_v44  ;;  %v202_v8 = vadd.f32 1.0, %v198_v3  ;;  %v97_v21 = vmul.f32 %v427_v60, %v656_v28  ;;  %v225_v59 = vsel %vm217_vm13, %v221_v25, %v213_v7  ;;  %v429_v18 = vpop.eup %428 }
  0x4d   :  { %v235_v40 = vsel %vm227_vm2, %v231_v27, %v223_v29  ;;  %v233_v2 = vsub.f32 0.0, %v225_v59  ;;  %v349_v10 = vmul.f32 -0.5, %v429_v18 }
  0x4e   :  { %v251_v38 = vmul.f32 %v235_v40, %v81_v34  ;;  %v236_v19 = vsel %vm228_vm6, %v232_v57, %v224_v44  ;;  %v206_v55 = vmul.f32 %v202_v8, %v648_v33  ;;  %v99_v9 = vsel %vm98_vm8, %v656_v28, %v97_v21 }
  0x4f   :  { %v252_v0 = vmul.f32 %v236_v19, %v88_v54  ;;  %v237_v23 = vsel %vm229_vm11, %v233_v2, %v225_v59  ;;  %v431_v37 = vpop.eup %430  ;;  %v102_v6 = vsel %vm100_vm12, %v101_v14, %v99_v9  ;;  %v355_v54 = vmul.f32 1.442695, %v349_v10 }
  0x50   :  { %v709_v5 = vmul.f32 0.5, %v251_v38  ;;  %v210_v15 = vadd.f32 0.7853982, %v206_v55  ;;  %v253_v24 = vmul.f32 %v237_v23, %v95_v12 }
  0x51   :  { %v725_v11 = vmul.f32 0.5, %v252_v0  ;;  %436 = vpow2.f32 %v355_v54 }
  0x52   :  { %v259_v47 = vmul.f32 %v709_v5, %v709_v5  ;;  %v214_v26 = vsel %vm122_vm14, %v210_v15, %v206_v55  ;;  %v744_v46 = vmul.f32 0.5, %v253_v24 }
  0x53   :  { %v260_v13 = vmul.f32 %v725_v11, %v725_v11  ;;  %v222_v29 = vsub.f32 1.5707964, %v214_v26 }
  0x54   :  { %v263_v42 = vmul.f32 2.7557319e-06, %v259_v47  ;;  %v299_v52 = vmul.f32 2.4801588e-05, %v259_v47  ;;  %v261_v51 = vmul.f32 %v744_v46, %v744_v46  ;;  %v433_v58 = vpop.eup %432 }
  0x55   :  { %v264_v33 = vmul.f32 2.7557319e-06, %v260_v13  ;;  %v300_v34 = vmul.f32 2.4801588e-05, %v260_v13  ;;  %v226_v35 = vsel %vm218_vm0, %v222_v29, %v214_v26  ;;  %v350_v21 = vmul.f32 -0.5, %v433_v58 }
  0x56   :  { %v267_v20 = vadd.f32 -0.0001984127, %v263_v42  ;;  %v303_v22 = vadd.f32 -0.0013888889, %v299_v52  ;;  %v234_v50 = vsub.f32 0.0, %v226_v35  ;;  %v435_v42 = vpop.eup %434 }
  0x57   :  { %v268_v39 = vadd.f32 -0.0001984127, %v264_v33  ;;  %v304_v27 = vadd.f32 -0.0013888889, %v300_v34  ;;  %v265_v60 = vmul.f32 2.7557319e-06, %v261_v51 }
  0x58   :  { %v271_v32 = vmul.f32 %v267_v20, %v259_v47  ;;  %v307_v36 = vmul.f32 %v303_v22, %v259_v47  ;;  %v238_v57 = vsel %vm230_vm15, %v234_v50, %v226_v35  ;;  %v301_v19 = vmul.f32 2.4801588e-05, %v261_v51 }
  0x59   :  { %v272_v49 = vmul.f32 %v268_v39, %v260_v13  ;;  %v308_v1 = vmul.f32 %v304_v27, %v260_v13  ;;  %v254_v62 = vmul.f32 %v238_v57, %v102_v6  ;;  %v269_v0 = vadd.f32 -0.0001984127, %v265_v60 }
  0x5a   :  { %v275_v41 = vadd.f32 0.008333334, %v271_v32  ;;  %v311_v43 = vadd.f32 0.041666668, %v307_v36  ;;  %v305_v25 = vadd.f32 -0.0013888889, %v301_v19  ;;  %v359_v22 = vmul.f32 %v431_v37, %v592_v16 }
  0x5b   :  { %v276_v31 = vadd.f32 0.008333334, %v272_v49  ;;  %v312_v38 = vadd.f32 0.041666668, %v308_v1  ;;  %v755_v7 = vmul.f32 0.5, %v254_v62  ;;  %v273_v53 = vmul.f32 %v269_v0, %v261_v51 }
  0x5c   :  { %v279_v40 = vmul.f32 %v275_v41, %v259_v47  ;;  %v315_v44 = vmul.f32 %v311_v43, %v259_v47  ;;  %v309_v14 = vmul.f32 %v305_v25, %v261_v51  ;;  %v357_v34 = vmul.f32 1.442695, %v350_v21 }
  0x5d   :  { %v280_v3 = vmul.f32 %v276_v31, %v260_v13  ;;  %v316_v28 = vmul.f32 %v312_v38, %v260_v13  ;;  %v262_v55 = vmul.f32 %v755_v7, %v755_v7  ;;  %v277_v15 = vadd.f32 0.008333334, %v273_v53  ;;  %v437_v31 = vpop.eup %436 }
  0x5e   :  { %v283_v61 = vadd.f32 -0.16666667, %v279_v40  ;;  %v319_v63 = vadd.f32 -0.5, %v315_v44  ;;  %v313_v33 = vadd.f32 0.041666668, %v309_v14  ;;  %438 = vpow2.f32 %v357_v34 }
  0x5f   :  { %v284_v8 = vadd.f32 -0.16666667, %v280_v3  ;;  %v320_v45 = vadd.f32 -0.5, %v316_v28  ;;  %v266_v18 = vmul.f32 2.7557319e-06, %v262_v55  ;;  %v281_v26 = vmul.f32 %v277_v15, %v261_v51 }
  0x60   :  { %v287_v4 = vmul.f32 %v283_v61, %v259_v47  ;;  %v323_v48 = vmul.f32 %v319_v63, %v259_v47  ;;  %v302_v20 = vmul.f32 2.4801588e-05, %v262_v55  ;;  %v317_v39 = vmul.f32 %v313_v33, %v261_v51 }
  0x61   :  { %v288_v59 = vmul.f32 %v284_v8, %v260_v13  ;;  %v324_v2 = vmul.f32 %v320_v45, %v260_v13  ;;  %v270_v32 = vadd.f32 -0.0001984127, %v266_v18  ;;  %v360_v13 = vmul.f32 %v435_v42, %v607_v30 }
  0x62   :  { %v291_v12 = vadd.f32 1.0, %v287_v4  ;;  %v327_v52 = vadd.f32 1.0, %v323_v48  ;;  %v306_v36 = vadd.f32 -0.0013888889, %v302_v20  ;;  %v321_v35 = vadd.f32 -0.5, %v317_v39 }
  0x63   :  { %v292_v9 = vadd.f32 1.0, %v288_v59  ;;  %v328_v29 = vadd.f32 1.0, %v324_v2  ;;  %v274_v10 = vmul.f32 %v270_v32, %v262_v55  ;;  %v361_v19 = vmul.f32 %v437_v31, %v627_v56 }
  0x64   :  { %v295_v47 = vmul.f32 %v291_v12, %v709_v5  ;;  %v285_v5 = vadd.f32 -0.16666667, %v281_v26  ;;  %v310_v41 = vmul.f32 %v306_v36, %v262_v55  ;;  %v325_v40 = vmul.f32 %v321_v35, %v261_v51 }
  0x65   :  { %v296_v24 = vmul.f32 %v292_v9, %v725_v11  ;;  %v278_v1 = vadd.f32 0.008333334, %v274_v10 }
  0x66   :  { %v331_v23 = vmul.f32 2.0, %v295_v47  ;;  %v289_v49 = vmul.f32 %v285_v5, %v261_v51  ;;  %v314_v6 = vadd.f32 0.041666668, %v310_v41  ;;  %v329_v60 = vadd.f32 1.0, %v325_v40 }
  0x67   :  { %v332_v43 = vmul.f32 2.0, %v296_v24  ;;  %v282_v38 = vmul.f32 %v278_v1, %v262_v55 }
  0x68   :  { %v335_v27 = vmul.f32 %v331_v23, %v327_v52  ;;  %v339_v16 = vmul.f32 %v331_v23, %v295_v47  ;;  %v293_v30 = vadd.f32 1.0, %v289_v49  ;;  %v318_v54 = vmul.f32 %v314_v6, %v262_v55  ;;  %v439_v45 = vpop.eup %438 }
  0x69   :  { %v336_v50 = vmul.f32 %v332_v43, %v328_v29  ;;  %v340_v11 = vmul.f32 %v332_v43, %v296_v24  ;;  %v286_v62 = vadd.f32 -0.16666667, %v282_v38 }
  0x6a   :  { %v363_v37 = vmul.f32 %v359_v22, %v335_v27  ;;  %v343_v44 = vsub.f32 1.0, %v339_v16  ;;  %v297_v63 = vmul.f32 %v293_v30, %v744_v46  ;;  %v322_v3 = vadd.f32 -0.5, %v318_v54 }
  0x6b   :  { %v364_v57 = vmul.f32 %v360_v13, %v336_v50  ;;  %v344_v61 = vsub.f32 1.0, %v340_v11  ;;  %v290_v4 = vmul.f32 %v286_v62, %v262_v55 }
  0x6c   :  { %367 = vst [vmem:[%s792_s1] sm:$0xff] %v363_v37  ;;  %v371_v58 = vmul.f32 %v359_v22, %v343_v44  ;;  %v333_v28 = vmul.f32 2.0, %v297_v63  ;;  %v326_v48 = vmul.f32 %v322_v3, %v262_v55  ;;  %v362_v55 = vmul.f32 %v439_v45, %v645_v17 }
  0x6d   :  { %368 = vst [vmem:[%s792_s1 + $0x8] sm:$0xff] %v364_v57  ;;  %v372_v51 = vmul.f32 %v360_v13, %v344_v61  ;;  %v294_v0 = vadd.f32 1.0, %v290_v4 }
  0x6e   :  { %396 = vst [vmem:[%s792_s1 + $0x20] sm:$0xff] %v371_v58  ;;  %v337_v46 = vmul.f32 %v333_v28, %v329_v60  ;;  %v341_v8 = vmul.f32 %v333_v28, %v297_v63  ;;  %v330_v12 = vadd.f32 1.0, %v326_v48 }
  0x6f   :  { %397 = vst [vmem:[%s792_s1 + $0x28] sm:$0xff] %v372_v51  ;;  %v298_v21 = vmul.f32 %v294_v0, %v755_v7 }
  0x70   :  { %v365_v25 = vmul.f32 %v361_v19, %v337_v46  ;;  %v345_v53 = vsub.f32 1.0, %v341_v8 }
  0x71   :  { %v334_v56 = vmul.f32 2.0, %v298_v21 }
  0x72   :  { %369 = vst [vmem:[%s792_s1 + $0x10] sm:$0xff] %v365_v25  ;;  %v373_v42 = vmul.f32 %v361_v19, %v345_v53 }
  0x73   :  { %v338_v52 = vmul.f32 %v334_v56, %v330_v12  ;;  %v342_v59 = vmul.f32 %v334_v56, %v298_v21 }
  0x74   :  { %398 = vst [vmem:[%s792_s1 + $0x30] sm:$0xff] %v373_v42 }
  0x75   :  { %v366_v2 = vmul.f32 %v362_v55, %v338_v52  ;;  %v346_v14 = vsub.f32 1.0, %v342_v59 }
  0x77   :  { %370 = vst [vmem:[%s792_s1 + $0x18] sm:$0xff] %v366_v2  ;;  %v374_v7 = vmul.f32 %v362_v55, %v346_v14 }
  0x79   :  { %399 = vst [vmem:[%s792_s1 + $0x38] sm:$0xff] %v374_v7 }

</bundles_post_ra>
